<compile_context>
chip_gen: v7x
topology: tpu7x:2x2x1
jax: 0.10.0
libtpu: 0.0.40
codegen_flags: <defaults>
</compile_context>

<pallas_src>
import jax
import jax.numpy as jnp
from jax.experimental import pallas as pl
from jax.experimental.pallas import tpu as pltpu


def _aligner_kernel(xk_ref, xv_ref, wk_ref, wv_ref, zk_ref, zv_ref):
    """zk = relu(xk @ Wk); zv = relu(xv @ Wv) for one row tile.

    Both dots accumulate in f32 on the MXU; each result is cast to its own
    output dtype and stored to its own output ref (two contiguous per-row DMA
    writebacks — compute has huge slack in this HBM-bound kernel, so the
    64-lane stores are not a bottleneck).
    """
    zk = jnp.dot(xk_ref[...], wk_ref[...], preferred_element_type=jnp.float32)
    zk_ref[...] = jnp.maximum(zk, 0.0).astype(zk_ref.dtype)
    zv = jnp.dot(xv_ref[...], wv_ref[...], preferred_element_type=jnp.float32)
    zv_ref[...] = jnp.maximum(zv, 0.0).astype(zv_ref.dtype)


def _round_up(x: int, m: int) -> int:
    return ((x + m - 1) // m) * m


def _round_down(x: int, m: int) -> int:
    return (x // m) * m


def _choose_tile_m(m: int, tm: int) -> int:
    """Pick the row-tile size.

    - tm is rounded down to a multiple of 8 (required whenever M > TM so the
      (TM, K)/(TM, N) block shapes satisfy the (8,128)-or-full-dim rule).
    - TM is capped so the grid has >= 4 steps when that keeps TM >= 8 rows:
      v7x shards the "parallel" M axis across its 2 TensorCores, so >= 4 steps
      gives each core >= 2 steps.  v5e/v6e (1 TC) are unaffected.
    - If the cap reaches/exceeds M, use a single full block (always legal).
    """
    tm_eff = max(8, _round_down(int(tm), 8))
    tm_cores = max(8, _round_up(pl.cdiv(m, 4), 8))
    tile = min(tm_eff, tm_cores)
    if tile >= m:
        return m
    return tile


def _fused_linear_relu(xk2d, xv2d, w_key, w_val, *, tm: int = 4096):
    """(relu(xk2d @ W_key), relu(xv2d @ W_val)) via one grid-tiled pallas_call.

    xk2d: (M, Kk), xv2d: (M, Kv), w_key: (Kk, Nk), w_val: (Kv, Nv).
    Returns ((M, Nk) in xk2d.dtype, (M, Nv) in xv2d.dtype).
    """
    m, kk = xk2d.shape
    mv, kv = xv2d.shape
    assert m == mv, "keys/vals must flatten to the same number of rows"
    assert w_key.shape[0] == kk and w_val.shape[0] == kv
    nk = w_key.shape[1]
    nv = w_val.shape[1]

    tile_m = _choose_tile_m(m, tm)
    grid = (pl.cdiv(m, tile_m),)

    zk_dtype = xk2d.dtype
    zv_dtype = xv2d.dtype

    flops = 2 * m * (kk * nk + kv * nv)
    bytes_accessed = (
        xk2d.size * xk2d.dtype.itemsize
        + xv2d.size * xv2d.dtype.itemsize
        + w_key.size * w_key.dtype.itemsize
        + w_val.size * w_val.dtype.itemsize
        + m * nk * jnp.dtype(zk_dtype).itemsize
        + m * nv * jnp.dtype(zv_dtype).itemsize
    )

    return pl.pallas_call(
        _aligner_kernel,
        out_shape=(
            jax.ShapeDtypeStruct((m, nk), zk_dtype),
            jax.ShapeDtypeStruct((m, nv), zv_dtype),
        ),
        grid_spec=pltpu.PrefetchScalarGridSpec(
            num_scalar_prefetch=0,
            grid=grid,
            in_specs=[
                pl.BlockSpec((tile_m, kk), lambda i: (i, 0)),   # x_keys row tile
                pl.BlockSpec((tile_m, kv), lambda i: (i, 0)),   # x_vals row tile
                pl.BlockSpec((kk, nk), lambda i: (0, 0)),       # W_key (resident)
                pl.BlockSpec((kv, nv), lambda i: (0, 0)),       # W_val (resident)
            ],
            out_specs=[
                pl.BlockSpec((tile_m, nk), lambda i: (i, 0)),   # z_key row tile
                pl.BlockSpec((tile_m, nv), lambda i: (i, 0)),   # z_val row tile
            ],
        ),
        compiler_params=pltpu.CompilerParams(
            dimension_semantics=("parallel",),
        ),
        cost_estimate=pl.CostEstimate(
            flops=flops, transcendentals=0, bytes_accessed=bytes_accessed
        ),
    )(xk2d, xv2d, w_key, w_val)


class TextualAligner:
    """JAX/Pallas port of ingestables TextualAligner ('simple', no bias, relu)."""

    def __init__(
        self,
        x_key_dim: int,
        x_val_dim: int,
        z_key_dim: int,
        z_val_dim: int,
        *,
        rng: jax.Array,
    ):
        k1, k2 = jax.random.split(rng)
        # Deterministic synthetic init (PyTorch uses kaiming-uniform; any
        # deterministic init is fine for this synthetic kernel).
        self.w_key = jax.random.normal(
            k1, (x_key_dim, z_key_dim), jnp.float32
        ) / jnp.sqrt(jnp.float32(x_key_dim))
        self.w_val = jax.random.normal(
            k2, (x_val_dim, z_val_dim), jnp.float32
        ) / jnp.sqrt(jnp.float32(x_val_dim))
        self.z_key_dim = z_key_dim
        self.z_val_dim = z_val_dim
        # Pre-cast bf16 weight copies for the optional bandwidth-halving path.
        self._w_key_bf16 = self.w_key.astype(jnp.bfloat16)
        self._w_val_bf16 = self.w_val.astype(jnp.bfloat16)
        # TODO(synk): key_bias/val_bias=True and non-relu activation_fn variants
        # are not exercised here (module defaults are bias=False, relu).

    def __call__(
        self,
        x_keys: jax.Array,
        x_vals: jax.Array,
        *,
        tm: int = 4096,
        use_bf16: bool = False,
    ):
        lead = x_keys.shape[:-1]
        assert x_vals.shape[:-1] == lead, (
            "fused aligner kernel expects matching leading dims for keys/vals"
        )
        xk2d = x_keys.reshape(-1, x_keys.shape[-1])
        xv2d = x_vals.reshape(-1, x_vals.shape[-1])
        if use_bf16:
            xk2d = xk2d.astype(jnp.bfloat16)
            xv2d = xv2d.astype(jnp.bfloat16)
            wk, wv = self._w_key_bf16, self._w_val_bf16
        else:
            wk, wv = self.w_key, self.w_val
        zk2d, zv2d = _fused_linear_relu(xk2d, xv2d, wk, wv, tm=tm)
        # Leading-dim reshape only: contiguous, no extra HBM pass.
        zk = zk2d.reshape(*lead, self.z_key_dim)
        zv = zv2d.reshape(*lead, self.z_val_dim)
        return zk, zv


if __name__ == "__main__":
    # Small shapes: batch=2, num_features(seq)=8, x_key_dim=32, x_val_dim=48,
    # z_key_dim=64, z_val_dim=64.
    B, F = 2, 8
    X_KEY_DIM, X_VAL_DIM = 32, 48
    Z_KEY_DIM, Z_VAL_DIM = 64, 64

    root = jax.random.PRNGKey(0)
    k_params, k_keys, k_vals, k_keys2, k_vals2 = jax.random.split(root, 5)

    aligner = TextualAligner(X_KEY_DIM, X_VAL_DIM, Z_KEY_DIM, Z_VAL_DIM, rng=k_params)

    x_keys = jax.random.normal(k_keys, (B, F, X_KEY_DIM), jnp.float32)
    x_vals = jax.random.normal(k_vals, (B, F, X_VAL_DIM), jnp.float32)

    z_keys, z_vals = aligner(x_keys, x_vals)
    jax.block_until_ready((z_keys, z_vals))

    # Reference check against plain JAX (f32 path, tight tolerance).
    ref_zk = jnp.maximum(x_keys @ aligner.w_key, 0.0)
    ref_zv = jnp.maximum(x_vals @ aligner.w_val, 0.0)
    assert z_keys.shape == (B, F, Z_KEY_DIM)
    assert z_vals.shape == (B, F, Z_VAL_DIM)
    assert jnp.allclose(z_keys, ref_zk, atol=1e-5, rtol=1e-5)
    assert jnp.allclose(z_vals, ref_zv, atol=1e-5, rtol=1e-5)

    # Second check exercising the M grid with a partial last tile
    # (M = 600 rows -> TM capped at 152 -> grid of 4 with a 144-row remainder).
    B2, F2 = 4, 150
    x_keys2 = jax.random.normal(k_keys2, (B2, F2, X_KEY_DIM), jnp.float32)
    x_vals2 = jax.random.normal(k_vals2, (B2, F2, X_VAL_DIM), jnp.float32)
    z_keys2, z_vals2 = aligner(x_keys2, x_vals2, tm=256)
    jax.block_until_ready((z_keys2, z_vals2))
    ref_zk2 = jnp.maximum(x_keys2 @ aligner.w_key, 0.0)
    ref_zv2 = jnp.maximum(x_vals2 @ aligner.w_val, 0.0)
    assert jnp.allclose(z_keys2, ref_zk2, atol=1e-5, rtol=1e-5)
    assert jnp.allclose(z_vals2, ref_zv2, atol=1e-5, rtol=1e-5)

    # Third check: optional bf16 bandwidth-halving path (loose tolerance vs
    # the f32 reference, since inputs/weights/outputs are bf16-rounded).
    z_keys3, z_vals3 = aligner(x_keys2, x_vals2, use_bf16=True)
    jax.block_until_ready((z_keys3, z_vals3))
    assert z_keys3.dtype == jnp.bfloat16 and z_vals3.dtype == jnp.bfloat16
    assert jnp.allclose(z_keys3.astype(jnp.float32), ref_zk2, atol=0.1, rtol=0.1)
    assert jnp.allclose(z_vals3.astype(jnp.float32), ref_zv2, atol=0.1, rtol=0.1)

    print("KERNEL_OK")
</pallas_src>

<mosaic_0001>
module attributes {stable_mosaic.version = 11 : i64} {
  func.func @_aligner_kernel(%arg0: i32, %arg1: memref<8x32xf32, #tpu.memory_space<vmem>>, %arg2: memref<8x48xf32, #tpu.memory_space<vmem>>, %arg3: memref<32x64xf32, #tpu.memory_space<vmem>>, %arg4: memref<48x64xf32, #tpu.memory_space<vmem>>, %arg5: memref<8x64xf32, #tpu.memory_space<vmem>>, %arg6: memref<8x64xf32, #tpu.memory_space<vmem>>) attributes {dimension_semantics = [#tpu.dimension_semantics<parallel>], iteration_bounds = array<i64: 2>, scalar_prefetch = 0 : i64, scratch_operands = 0 : i64, tpu.core_type = #tpu.core_type<tc>, window_params = [{transform_indices = @transform_0, window_bounds = array<i64: 8, 32>}, {transform_indices = @transform_1, window_bounds = array<i64: 8, 48>}, {pipeline_mode = #tpu.pipeline_mode<synchronous>, transform_indices = @transform_2, window_bounds = array<i64: 32, 64>}, {pipeline_mode = #tpu.pipeline_mode<synchronous>, transform_indices = @transform_3, window_bounds = array<i64: 48, 64>}, {transform_indices = @transform_4, window_bounds = array<i64: 8, 64>}, {transform_indices = @transform_5, window_bounds = array<i64: 8, 64>}]} {
    %c0 = arith.constant 0 : index
    %c0_0 = arith.constant 0 : index
    %0 = vector.load %arg1[%c0, %c0_0] : memref<8x32xf32, #tpu.memory_space<vmem>>, vector<8x32xf32>
    %c0_1 = arith.constant 0 : index
    %c0_2 = arith.constant 0 : index
    %1 = vector.load %arg3[%c0_1, %c0_2] : memref<32x64xf32, #tpu.memory_space<vmem>>, vector<32x64xf32>
    %cst = arith.constant dense<0.000000e+00> : vector<8x64xf32>
    %2 = tpu.matmul %0, %1, %cst {dimension_numbers = #tpu.dot_dimension_numbers<[1], [0], [0], [1], [0, 0, 1, 1], [], []>} : vector<8x32xf32>, vector<32x64xf32>, vector<8x64xf32> -> vector<8x64xf32>
    %cst_3 = arith.constant 0.000000e+00 : f32
    %3 = vector.broadcast %cst_3 : f32 to vector<8x64xf32>
    %4 = arith.maximumf %2, %3 : vector<8x64xf32>
    %c0_4 = arith.constant 0 : index
    %c0_5 = arith.constant 0 : index
    %5 = vector.load %arg5[%c0_4, %c0_5] : memref<8x64xf32, #tpu.memory_space<vmem>>, vector<8x64xf32>
    tpu.vector_store %arg5[%c0_4, %c0_5], %4 {strides = array<i32>} : memref<8x64xf32, #tpu.memory_space<vmem>>, vector<8x64xf32>,
    %c0_6 = arith.constant 0 : index
    %c0_7 = arith.constant 0 : index
    %6 = vector.load %arg2[%c0_6, %c0_7] : memref<8x48xf32, #tpu.memory_space<vmem>>, vector<8x48xf32>
    %c0_8 = arith.constant 0 : index
    %c0_9 = arith.constant 0 : index
    %7 = vector.load %arg4[%c0_8, %c0_9] : memref<48x64xf32, #tpu.memory_space<vmem>>, vector<48x64xf32>
    %cst_10 = arith.constant dense<0.000000e+00> : vector<8x64xf32>
    %8 = tpu.matmul %6, %7, %cst_10 {dimension_numbers = #tpu.dot_dimension_numbers<[1], [0], [0], [1], [0, 0, 1, 1], [], []>} : vector<8x48xf32>, vector<48x64xf32>, vector<8x64xf32> -> vector<8x64xf32>
    %cst_11 = arith.constant 0.000000e+00 : f32
    %9 = vector.broadcast %cst_11 : f32 to vector<8x64xf32>
    %10 = arith.maximumf %8, %9 : vector<8x64xf32>
    %c0_12 = arith.constant 0 : index
    %c0_13 = arith.constant 0 : index
    %11 = vector.load %arg6[%c0_12, %c0_13] : memref<8x64xf32, #tpu.memory_space<vmem>>, vector<8x64xf32>
    tpu.vector_store %arg6[%c0_12, %c0_13], %10 {strides = array<i32>} : memref<8x64xf32, #tpu.memory_space<vmem>>, vector<8x64xf32>,
    return
  }
  func.func @transform_0(%arg0: i32) -> (i32, i32) {
    %c0_i32 = arith.constant 0 : i32
    %c0_i32_0 = arith.constant 0 : i32
    return %arg0, %c0_i32 : i32, i32
  }
  func.func @transform_1(%arg0: i32) -> (i32, i32) {
    %c0_i32 = arith.constant 0 : i32
    %c0_i32_0 = arith.constant 0 : i32
    return %arg0, %c0_i32 : i32, i32
  }
  func.func @transform_2(%arg0: i32) -> (i32, i32) {
    %c0_i32 = arith.constant 0 : i32
    %c0_i32_0 = arith.constant 0 : i32
    %c0_i32_1 = arith.constant 0 : i32
    return %c0_i32, %c0_i32_0 : i32, i32
  }
  func.func @transform_3(%arg0: i32) -> (i32, i32) {
    %c0_i32 = arith.constant 0 : i32
    %c0_i32_0 = arith.constant 0 : i32
    %c0_i32_1 = arith.constant 0 : i32
    return %c0_i32, %c0_i32_0 : i32, i32
  }
  func.func @transform_4(%arg0: i32) -> (i32, i32) {
    %c0_i32 = arith.constant 0 : i32
    %c0_i32_0 = arith.constant 0 : i32
    return %arg0, %c0_i32 : i32, i32
  }
  func.func @transform_5(%arg0: i32) -> (i32, i32) {
    %c0_i32 = arith.constant 0 : i32
    %c0_i32_0 = arith.constant 0 : i32
    return %arg0, %c0_i32 : i32, i32
  }
}

</mosaic_0001>

<bundles_post_ra>
// kernel: tpu_custom_call.1
= control target key start
LH: loop header
LB: loop body
LE: loop exit
PB: predicated region body
PF: predicated region fallthrough
CT: control target
= control target key end

     0   :  { %s1400_s0 = inlined_call_operand.hbm [shape: f32[16,32], index: 0, kind: input, shape index: {}]   ;;  %s1401_s1 = inlined_call_operand.hbm [shape: f32[16,48], index: 1, kind: input, shape index: {}]   ;;  %s1402_s2 = inlined_call_operand.hbm [shape: f32[32,64], index: 2, kind: input, shape index: {}]   ;;  %s1403_s3 = inlined_call_operand.hbm [shape: f32[48,64], index: 3, kind: input, shape index: {}]   ;;  %s1404_s4 = inlined_call_operand.hbm [shape: f32[16,64], index: 4, kind: output, shape index: {0}]   ;;  %s1405_s5 = inlined_call_operand.hbm [shape: f32[16,64], index: 5, kind: output, shape index: {1}]  }
   0x1   :  { %1410 = sst [smem:[#allocation19_spill]] %s1402_s2 }
   0x2   :  { %1411 = sst [smem:[#allocation20_spill]] %s1403_s3 }
   0x3   :  { %11 = vsyncpa [#allocation3], 0 }
   0x4   :  { %13 = vsyncpa [#allocation3 + $0x1], 0 }
   0x5   :  { %14 = vsyncpa [#allocation6], 0 }
   0x6   :  { %16 = vsyncpa [#allocation6 + $0x1], 0 }
   0x7   :  { %17 = vsyncpa [#allocation9], 0 }
   0x8   :  { %18 = vsyncpa [#allocation4], 0 }
   0x9   :  { %20 = vsyncpa [#allocation4 + $0x1], 0 }
   0xa   :  { %21 = vsyncpa [#allocation12], 0 }
   0xb   :  { %23 = vsyncpa [#allocation12 + $0x1], 0  ;;  %s1086_s18 = smov 0   ;;  %s1088_s19 = smov 0  }
   0xc   :  { %s1090_s20 = smov 0   ;;  %s1092_s21 = smov 0  }
   0xd LB: > { %s1107_s22 = sadd.s32 4294967295, %s1043_s21   ;;  %s658_s23 = sadd.s32 4294967294, %s1043_s21   ;;  %s1043_s21 = sphi %s1092_s21, %s1433_s21   ;;  %s1039_s20 = sphi %s1090_s20, %s1432_s20   ;;  %s1035_s19 = sphi %s1088_s19, %s1431_s19   ;;  %s1031_s18 = sphi %s1086_s18, %s1430_s18  }
   0xe   : > { %p49_p0 = scmp.ne.s32.totalorder %s1035_s19, %s1031_s18  ;;  %p1406_p1 = scmp.eq.s32.totalorder %s1107_s22, 0 }
   0xf   : > { %p147_p3 = scmp.eq.s32.totalorder %s658_s23, 1  ;;  %p659_p5 = scmp.ge.s32.totalorder %s1043_s21, 1 }
  0x10   : > { %p1116_p4 = por %p1406_p1, %p49_p0  ;;  %p180_p7 = scmp.lt.s32.totalorder %s1043_s21, 3 }
  0x11   : > { %p1121_p6 = por %p147_p3, %p49_p0  ;;  %s1045_s27 = smov [#allocation7]  }
  0x12   : > { %s1412_s24 = scalar_select %p1116_p4, 1, 0 }
  0x13   : > { %s1413_s25 = scalar_select %p1121_p6, 1, 0 }
  0x14   : > { %p1126_p8 = pnand %p659_p5, %p180_p7  ;;  %s192_s28 = sshll.u32 %s1045_s27, 4  ;;  %s1130_s28 = int_to_ptr.vmem [resolvable:$true] %s192_s28 }
  0x15   : > { %s1046_s30 = smov [#allocation8]   ;;  %s1416_s2 = sld [smem:[#allocation19_spill]] }
  0x16   : > { %s1414_s26 = scalar_select %p1126_p8, 1, 0 }
  0x17   : > { %p751_p9 = pneg %p1126_p8  ;;  %s205_s6 = sshll.u32 %s1046_s30, 4  ;;  %s1141_s6 = int_to_ptr.vmem [resolvable:$true] %s205_s6 }
  0x19   : > { %p1137_p11 = pnand %p751_p9, %p1406_p1 }
  0x1b   : > { %s817_s9 = scalar_lea.hbm %s1416_s2, 512  ;;  %p819_p13 = pneg %p1137_p11 }
  0x1c   : > { %p818_p12 = scmp.ne.s32.totalorder %s1416_s2, %s817_s9  ;;  %p824_p5 = scmp.lt.u32.totalorder %s817_s9, %s1416_s2 }
  0x1e   : > { %p820_p0 = pnand %p819_p13, %p818_p12 }
  0x20   : > { %p821_p3 = pneg %p820_p0 }
  0x22   : > { %p826_p7 = pnand %p824_p5, %p821_p3 }
  0x24   : > { %829 = shalt.err (!%p826_p7)
}
  0x25   : > { %s830_s14 = scalar_lea.vmem %s1130_s28, 512  ;;  %p838_p2 = scmp.lt.s32.totalorder %s1130_s28, %s1130_s28 }
  0x26   : > { %p831_p9 = scmp.ne.s32.totalorder %s1130_s28, %s830_s14  ;;  %p839_p12 = scmp.lt.s32.totalorder %s830_s14, %s830_s14 }
  0x28   : > { %p833_p10 = pnand %p831_p9, %p819_p13  ;;  %p840_p0 = por %p839_p12, %p838_p2 }
  0x2a   : > { %p834_p1 = pneg %p833_p10 }
  0x2c   : > { %p841_p6 = pnand %p840_p0, %p834_p1 }
  0x2e   : > { %844 = shalt.err (!%p841_p6)
}
  0x2f   : > { %s1047_s15 = smov 128   ;;  %s1048_s16 = smov 8  }
  0x30   : > { %754 = dma.hbm_to_vmem [thread:$0]  (!%p1137_p11), %s1416_s2, 512, %s1130_s28, [#allocation6], %s1047_s15, %s1047_s15, %s1048_s16  }
  0x31   : > { %s1417_s3 = sld [smem:[#allocation20_spill]] }
  0x37   : > { %s845_s7 = scalar_lea.hbm %s1417_s3, 768 }
  0x38   : > { %p846_p2 = scmp.ne.s32.totalorder %s1417_s3, %s845_s7  ;;  %p852_p10 = scmp.lt.u32.totalorder %s845_s7, %s1417_s3 }
  0x3a   : > { %p848_p1 = pnand %p846_p2, %p819_p13 }
  0x3c   : > { %p849_p6 = pneg %p848_p1 }
  0x3e   : > { %p854_p3 = pnand %p852_p10, %p849_p6 }
  0x40   : > { %857 = shalt.err (!%p854_p3)
}
  0x41   : > { %s858_s28 = scalar_lea.vmem %s1141_s6, 768  ;;  %p866_p12 = scmp.lt.s32.totalorder %s1141_s6, %s1141_s6 }
  0x42   : > { %p859_p5 = scmp.ne.s32.totalorder %s1141_s6, %s858_s28  ;;  %p867_p0 = scmp.lt.s32.totalorder %s858_s28, %s858_s28 }
  0x44   : > { %p861_p7 = pnand %p859_p5, %p819_p13  ;;  %p868_p2 = por %p867_p0, %p866_p12 }
  0x46   : > { %p862_p9 = pneg %p861_p7 }
  0x48   : > { %p869_p1 = pnand %p868_p2, %p862_p9 }
  0x4a   : > { %872 = shalt.err (!%p869_p1)
}
  0x4b   : > { %757 = dma.hbm_to_vmem [thread:$0]  (!%p1137_p11), %s1417_s3, 768, %s1141_s6, [#allocation9], %s1047_s15, %s1047_s15, %s1048_s16  }
  0x4c   : > { %s1196_s14 = sadd.s32 1, %s1043_s21   ;;  %s36_s29 = sadd.s32 1, %s1039_s20 }
  0x4d   : > { %s33_s17 = ssub.s32 %s1043_s21, %s1196_s14  ;;  %p43_p13 = scmp.ne.s32.totalorder %s1039_s20, %s1035_s19 }
  0x4e   : > { %p34_p6 = scmp.eq.s32.totalorder %s33_s17, 0  ;;  %p44_p10 = scmp.eq.s32.totalorder %s1043_s21, 0 }
  0x4f   : > { %p1418_p3 = scmp.eq.s32.totalorder %s1107_s22, 1  ;;  %p774_p7 = scmp.lt.s32.totalorder %s1043_s21, 2 }
  0x50   : > { %s1212_s27 = scalar_select %p34_p6, %s1039_s20, %s36_s29  }
  0x51   : > { %p1206_p5 = por %p1418_p3, %p43_p13  ;;  %p45_p9 = por %p44_p10, %p43_p13 }
  0x52   : > { %s219_s30 = sand.u32 1, %s1039_s20   ;;  %s664_s15 = sshll.u32 %s1043_s21, 7 }
  0x53   : > { %s1419_s23 = scalar_select %p1206_p5, 1, 0 }
  0x54   : > { %s1215_s6 = sshll.u32 %s219_s30, 3  ;;  %s1221_s8 = scalar_lea.hbm %s1400_s0, %s664_s15 }
  0x55   : > { %s223_s9 = scalar_lea.vmem [#allocation2], %s1215_s6  ;;  %p1226_p11 = pnand %p774_p7, %p45_p9 }
  0x56   : > { %s230_s10 = sshll.u32 %s223_s9, 4  ;;  %s1233_s13 = scalar_lea.hbm %s1401_s1, %s664_s15  ;;  %s1224_s10 = int_to_ptr.vmem [resolvable:$true] %s230_s10 }
  0x57   : > { %s237_s29 = sand.u32 1, %s1043_s21   ;;  %s220_s17 = scalar_lea.sflag [#allocation3], %s219_s30 }
  0x58   : > { %s873_s16 = scalar_lea.hbm %s1221_s8, 128  ;;  %p875_p0 = pneg %p1226_p11 }
  0x59   : > { %p874_p12 = scmp.ne.s32.totalorder %s1221_s8, %s873_s16  ;;  %s878_s2 = scalar_lea.hbm %s1400_s0, 256 }
  0x5a   : > { %p879_p13 = scmp.lt.u32.totalorder %s1221_s8, %s1400_s0  ;;  %p880_p6 = scmp.lt.u32.totalorder %s878_s2, %s873_s16 }
  0x5b   : > { %p876_p2 = pnand %p875_p0, %p874_p12  ;;  %p882_p3 = scmp.lt.u32.totalorder %s873_s16, %s1221_s8 }
  0x5c   : > { %p881_p10 = por %p880_p6, %p879_p13 }
  0x5d   : > { %p877_p1 = pneg %p876_p2 }
  0x5e   : > { %p883_p7 = por %p882_p3, %p881_p10 }
  0x60   : > { %p884_p9 = pnand %p883_p7, %p877_p1 }
  0x62   : > { %887 = shalt.err (!%p884_p9)
}
  0x63   : > { %s888_s30 = scalar_lea.vmem %s1224_s10, 128  ;;  %s1049_s15 = smov [#allocation2]  }
  0x64   : > { %p889_p12 = scmp.ne.s32.totalorder %s1224_s10, %s888_s30  ;;  %s893_s12 = sshll.u32 %s1049_s15, 4  ;;  %s894_s12 = int_to_ptr.vmem [resolvable:$false] %s893_s12 }
  0x65   : > { %s895_s3 = scalar_lea.vmem %s894_s12, 256  ;;  %p896_p4 = scmp.lt.s32.totalorder %s1224_s10, %s894_s12 }
  0x66   : > { %p891_p2 = pnand %p889_p12, %p875_p0  ;;  %p897_p13 = scmp.lt.s32.totalorder %s895_s3, %s888_s30 }
  0x68   : > { %p892_p5 = pneg %p891_p2  ;;  %p898_p6 = por %p897_p13, %p896_p4 }
  0x6a   : > { %p899_p10 = pnand %p898_p6, %p892_p5 }
  0x6c   : > { %902 = shalt.err (!%p899_p10)
}
  0x6d   : > { %761 = dma.hbm_to_vmem [thread:$0]  (!%p1226_p11), %s1221_s8, 128, %s1224_s10, %s220_s17  }
  0x6e   : > { %s241_s2 = scalar_lea.vmem [#allocation5], %s1215_s6  ;;  %s238_s7 = scalar_lea.sflag [#allocation6], %s237_s29 }
  0x6f   : > { %s248_s16 = sshll.u32 %s241_s2, 4  ;;  %s903_s9 = scalar_lea.hbm %s1233_s13, 128  ;;  %s249_s16 = int_to_ptr.vmem [resolvable:$true] %s248_s16 }
  0x70   : > { %p904_p4 = scmp.ne.s32.totalorder %s1233_s13, %s903_s9  ;;  %s908_s15 = scalar_lea.hbm %s1401_s1, 256 }
  0x71   : > { %p909_p3 = scmp.lt.u32.totalorder %s1233_s13, %s1401_s1  ;;  %p910_p7 = scmp.lt.u32.totalorder %s908_s15, %s903_s9 }
  0x72   : > { %p906_p5 = pnand %p904_p4, %p875_p0  ;;  %p912_p12 = scmp.lt.u32.totalorder %s903_s9, %s1233_s13 }
  0x73   : > { %p911_p9 = por %p910_p7, %p909_p3 }
  0x74   : > { %p907_p1 = pneg %p906_p5 }
  0x75   : > { %p913_p2 = por %p912_p12, %p911_p9 }
  0x77   : > { %p914_p13 = pnand %p913_p2, %p907_p1 }
  0x79   : > { %917 = shalt.err (!%p914_p13)
}
  0x7a   : > { %s918_s6 = scalar_lea.vmem %s249_s16, 128  ;;  %s1050_s8 = smov [#allocation5]  }
  0x7b   : > { %p919_p6 = scmp.ne.s32.totalorder %s249_s16, %s918_s6  ;;  %s923_s10 = sshll.u32 %s1050_s8, 4  ;;  %s924_s10 = int_to_ptr.vmem [resolvable:$false] %s923_s10 }
  0x7c   : > { %s925_s29 = scalar_lea.vmem %s924_s10, 256  ;;  %p926_p5 = scmp.lt.s32.totalorder %s249_s16, %s924_s10 }
  0x7d   : > { %p921_p10 = pnand %p919_p6, %p875_p0  ;;  %p927_p8 = scmp.lt.s32.totalorder %s925_s29, %s918_s6 }
  0x7f   : > { %p922_p4 = pneg %p921_p10  ;;  %p928_p3 = por %p927_p8, %p926_p5 }
  0x81   : > { %p929_p7 = pnand %p928_p3, %p922_p4 }
  0x83   : > { %932 = shalt.err (!%p929_p7)
}
  0x84   : > { %764 = dma.hbm_to_vmem [thread:$0]  (!%p1226_p11), %s1233_s13, 128, %s249_s16, %s238_s7  }
  0x85   : > { %p1421_p1 = scmp.ne.s32.totalorder %s1414_s26, 0 }
  0x86   : > { %s1286_s17 = sand.u32 (!%p1421_p1), 1, %s1035_s19   ;;  %p1422_p8 = scmp.ne.s32.totalorder (!%p1421_p1), %s1412_s24, 0 }
  0x87   : > { %257 = sbr.rel (%p1421_p1) target bundleno = 417 (0x1a1), region = 36  ;;  %s1289_s2 = sshll.u32 (!%p1421_p1), %s1286_s17, 3 }
  0x88   : > { %s260_s9 = scalar_lea.sflag (!%p1421_p1), [#allocation3], %s1286_s17  ;;  %s263_s28 = scalar_lea.vmem (!%p1421_p1), [#allocation2], %s1289_s2 }
  0x8e   : > { %1006 = dma.done.wait (%p1422_p8), %s260_s9, 128  }
  0x8f   : > { %1008 = vsyncadd (%p1422_p8), %s260_s9, 4294967168  ;;  %s268_s26 = sand.u32 1, %s1107_s22   ;;  %s272_s13 = scalar_lea.vmem [#allocation5], %s1289_s2 }
  0x90   : > { %s269_s11 = scalar_lea.sflag [#allocation6], %s268_s26 }
  0x91   : > { %1010 = dma.done.wait (%p1422_p8), %s269_s11, 128  }
  0x92   : > { %1012 = vsyncadd (%p1422_p8), %s269_s11, 4294967168  ;;  %p1423_p11 = scmp.eq.s32.totalorder %s1107_s22, 0 }
  0x94   : > { %1014 = dma.done.wait (%p1423_p11), [#allocation6], 512   ;;  %p1424_p0 = pmov %p1423_p11 }
  0x96   : > { %1016 = vsyncadd (%p1424_p0), [#allocation6], 4294966784  ;;  %p1425_p9 = pmov %p1424_p0 }
  0x97   : > { %p1426_p12 = pmov %p1424_p0 }
  0x98   : > { %1018 = dma.done.wait (%p1425_p9), [#allocation9], 768  }
  0x99   : > { %1020 = vsyncadd (%p1426_p12), [#allocation9], 4294966528  ;;  %v1051_v0 = vmov 0.0|0.0   ;;  %vm1052_vm0 = vmmov 0   ;;  %v1053_v1 = vmov 0.0   ;;  %v400_v2 = vld [vmem:[#allocation8] sm:$0xff] }
  0x9a   : > { %726 = vmatprep.subr.bf16.mxu1 %v1051_v0  ;;  %720 = vmatprep.subr.bf16.mxu0 %v1051_v0  ;;  %v401_v3 = vld [vmem:[#allocation8 + $0x8] sm:$0xff]  ;;  %v318_v4 = vld [vmem:[#allocation7] sm:$0xff]  ;;  %v402_v7 = vld [vmem:[#allocation8 + $0x10] sm:$0xff]  ;;  %vm322_vm1 = vcmask 261120   ;;  %vm406_vm2 = vcmask 392192   ;;  %s678_s24 = sshll.u32 %s1107_s22, 7 }
  0x9b   : > { %702 = vmatprep.mubr.msk.f32.mxu0 %vm1052_vm0, %v1053_v1  ;;  %717 = vmatprep.mubr.msk.f32.mxu1 %vm1052_vm0, %v1053_v1  ;;  %v727_v5 = vpack.c.bf16 %v401_v3, %v400_v2  ;;  %v319_v6 = vld [vmem:[#allocation7 + $0x8] sm:$0xff]  ;;  %v403_v8 = vld [vmem:[#allocation8 + $0x18] sm:$0xff]  ;;  %v320_v10 = vld [vmem:[#allocation7 + $0x10] sm:$0xff]  ;;  %s309_s16 = scalar_lea.vmem [#allocation10], %s1289_s2  ;;  %vm397_vm3 = vcmask 523264   ;;  %s316_s30 = scalar_lea.vmem [#allocation11], %s1289_s2 }
  0x9c   : > { %v721_v9 = vpack.c.bf16 %v319_v6, %v318_v4  ;;  %v321_v11 = vld [vmem:[#allocation7 + $0x18] sm:$0xff]  ;;  %v730_v12 = vpack.c.bf16 %v403_v8, %v402_v7  ;;  %v404_v14 = vld [vmem:[#allocation8 + $0x20] sm:$0xff]  ;;  %v405_v15 = vld [vmem:[#allocation8 + $0x28] sm:$0xff]  ;;  %s501_s7 = sshll.u32 %s309_s16, 4  ;;  %s514_s15 = sshll.u32 %s316_s30, 4  ;;  %s1325_s7 = int_to_ptr.vmem [resolvable:$true] %s501_s7  ;;  %s1333_s15 = int_to_ptr.vmem [resolvable:$true] %s514_s15 }
  0x9d   : > { %728 = vmatpush3.bf16.msra.mxu1 %v727_v5  ;;  %v724_v13 = vpack.c.bf16 %v321_v11, %v320_v10  ;;  %v733_v16 = vpack.c.bf16 %v405_v15, %v404_v14  ;;  %v317_v17 = vld [vmem:[%s263_s28] sm:$0xff]  ;;  %v399_v18 = vld [vmem:[%s272_s13] sm:$0xff]  ;;  %s1323_s6 = scalar_lea.hbm %s1404_s4, %s678_s24  ;;  %s1331_s10 = scalar_lea.hbm %s1405_s5, %s678_s24 }
  0x9e   : > { %722 = vmatpush3.bf16.msra.mxu0 %v721_v9  ;;  %729 = vmatprep.subr.bf16.mxu1 %v1051_v0  ;;  %s483_s29 = scalar_lea.sflag [#allocation4], %s1286_s17  ;;  %s933_s9 = scalar_lea.vmem %s1325_s7, 128 }
  0x9f   : > { %723 = vmatprep.subr.bf16.mxu0 %v1051_v0  ;;  %p934_p2 = scmp.ne.s32.totalorder %s1325_s7, %s933_s9  ;;  %p1427_p13 = scmp.ne.s32.totalorder %s1419_s23, 0 }
  0xa0   : > { %s1054_s28 = smov [#allocation10]  }
  0xa1   : > { %731 = vmatpush3.bf16.msra.mxu1 %v730_v12  ;;  %p935_p6 = pnand %p934_p2, %p1427_p13  ;;  %s937_s26 = sshll.u32 %s1054_s28, 4  ;;  %s938_s26 = int_to_ptr.vmem [resolvable:$false] %s937_s26 }
  0xa2   : > { %725 = vmatpush3.bf16.msra.mxu0 %v724_v13  ;;  %732 = vmatprep.subr.bf16.mxu1 %v1051_v0  ;;  %s939_s11 = scalar_lea.vmem %s938_s26, 256  ;;  %p940_p4 = scmp.lt.s32.totalorder %s1325_s7, %s938_s26 }
  0xa3   : > { %p936_p10 = pneg %p935_p6  ;;  %p941_p5 = scmp.lt.s32.totalorder %s939_s11, %s933_s9 }
  0xa5   : > { %734 = vmatpush3.bf16.msra.mxu1 %v733_v16  ;;  %703 = vmatmul.mubr.msk.f32.vlgmr.msra.gmra.mrb[0].mxu0 %vm322_vm1, %v317_v17  ;;  %p942_p3 = por %p941_p5, %p940_p4 }
  0xa7   : > { %p943_p7 = pnand %p942_p3, %p936_p10 }
  0xa8   : > { %718 = vmatmul.mubr.msk.f32.vlgmr.msra.gmra.mrb[0].mxu1 %vm406_vm2, %v399_v18 }
 0x178   : > { %v392_v19 = vpop.f32.mrb[0].mxu0 }
 0x179   : > { %v396_v20 = vmax.f32 %v392_v19, 0.0  ;;  %v704_v21 = vpop.f32.mrb[1].mxu0 }
 0x17b   : > { %v476_v22 = vpop.f32.mrb[0].mxu1  ;;  %398 = vst.msk [vmem:[%s309_s16] sm:$0xff] %vm397_vm3, %v396_v20 }
 0x17c   : > { %v480_v23 = vmax.f32 %v476_v22, 0.0  ;;  %v719_v24 = vpop.f32.mrb[1].mxu1 }
 0x17d   : > { %946 = shalt.err (!%p943_p7)
}
 0x17e   : > { %s947_s13 = scalar_lea.hbm %s1323_s6, 128  ;;  %s951_s12 = scalar_lea.hbm %s1404_s4, 256 }
 0x17f   : > { %p948_p1 = scmp.ne.s32.totalorder %s1323_s6, %s947_s13  ;;  %p952_p0 = scmp.lt.u32.totalorder %s1323_s6, %s1404_s4 }
 0x180   : > { %p953_p9 = scmp.lt.u32.totalorder %s951_s12, %s947_s13  ;;  %p955_p2 = scmp.lt.u32.totalorder %s947_s13, %s1323_s6 }
 0x181   : > { %p949_p8 = pnand %p948_p1, %p1427_p13 }
 0x182   : > { %p954_p12 = por %p953_p9, %p952_p0 }
 0x183   : > { %p950_p11 = pneg %p949_p8 }
 0x184   : > { %p956_p6 = por %p955_p2, %p954_p12 }
 0x186   : > { %p957_p10 = pnand %p956_p6, %p950_p11 }
 0x188   : > { %960 = shalt.err (!%p957_p10)
}
 0x189   : > { %747 = dma.vmem_to_hbm [thread:$0]  (%p1427_p13), %s1325_s7, 128, %s1323_s6, %s483_s29   ;;  %481 = vst.msk [vmem:[%s316_s30] sm:$0xff] %vm397_vm3, %v480_v23 }
 0x18a   : > { %s488_s8 = scalar_lea.sflag [#allocation12], %s1286_s17  ;;  %s961_s9 = scalar_lea.vmem %s1333_s15, 128 }
 0x18b   : > { %p962_p4 = scmp.ne.s32.totalorder %s1333_s15, %s961_s9  ;;  %s1055_s28 = smov [#allocation11]  }
 0x18c   : > { %s965_s26 = sshll.u32 %s1055_s28, 4  ;;  %s966_s26 = int_to_ptr.vmem [resolvable:$false] %s965_s26 }
 0x18d   : > { %p963_p5 = pnand %p962_p4, %p1427_p13  ;;  %s967_s11 = scalar_lea.vmem %s966_s26, 256 }
 0x18e   : > { %p968_p7 = scmp.lt.s32.totalorder %s1333_s15, %s966_s26  ;;  %p969_p1 = scmp.lt.s32.totalorder %s967_s11, %s961_s9 }
 0x18f   : > { %p964_p3 = pneg %p963_p5 }
 0x190   : > { %p970_p8 = por %p969_p1, %p968_p7 }
 0x192   : > { %p971_p11 = pnand %p970_p8, %p964_p3 }
 0x194   : > { %974 = shalt.err (!%p971_p11)
}
 0x195   : > { %s975_s17 = scalar_lea.hbm %s1331_s10, 128  ;;  %s979_s30 = scalar_lea.hbm %s1405_s5, 256 }
 0x196   : > { %p976_p0 = scmp.ne.s32.totalorder %s1331_s10, %s975_s17  ;;  %p980_p2 = scmp.lt.u32.totalorder %s1331_s10, %s1405_s5 }
 0x197   : > { %p981_p6 = scmp.lt.u32.totalorder %s979_s30, %s975_s17  ;;  %p983_p4 = scmp.lt.u32.totalorder %s975_s17, %s1331_s10 }
 0x198   : > { %p977_p9 = pnand %p976_p0, %p1427_p13 }
 0x199   : > { %p982_p10 = por %p981_p6, %p980_p2 }
 0x19a   : > { %p978_p12 = pneg %p977_p9 }
 0x19b   : > { %p984_p5 = por %p983_p4, %p982_p10 }
 0x19d   : > { %p985_p3 = pnand %p984_p5, %p978_p12 }
 0x19f   : > { %988 = shalt.err (!%p985_p3)
}
 0x1a0   : > { %748 = dma.vmem_to_hbm [thread:$0]  (%p1427_p13), %s1333_s15, 128, %s1331_s10, %s488_s8  }
 0x1a1 PF: > { %s526_s13 = sand.u32 1, %s1031_s18   ;;  %p1428_p7 = scmp.ne.s32.totalorder %s1413_s25, 0 }
 0x1a2   : > { %p1429_p1 = scmp.ge.s32.totalorder %s1043_s21, 2  ;;  %s527_s24 = scalar_lea.sflag [#allocation4], %s526_s13 }
 0x1a4   : > { %p766_p8 = pnand %p1429_p1, %p1428_p7 }
 0x1a6   : > { %1022 = dma.done.wait (!%p766_p8), %s527_s24, 128  }
 0x1a7   : > { %1024 = vsyncadd (!%p766_p8), %s527_s24, 4294967168  ;;  %s536_s16 = scalar_lea.sflag [#allocation12], %s526_s13 }
 0x1a8   : > { %1026 = dma.done.wait (!%p766_p8), %s536_s16, 128  }
 0x1a9   : > { %1028 = vsyncadd (!%p766_p8), %s536_s16, 4294967168  ;;  %p26_p13 = scmp.ge.s32.totalorder %s1196_s14, 4   ;;  %s1430_s18 = smov %s1035_s19 }
 0x1aa   : > { %s1431_s19 = smov %s1039_s20  ;;  %s1432_s20 = smov %s1212_s27 }
 0x1ab   : > { %s1433_s21 = smov %s1196_s14  ;;  %28 = sbr.rel (!%p26_p13) target bundleno = 13 (0xd), region = 119 }
 0x1b2   :  { %541 = vsyncpa [#allocation3], 1 }
 0x1b3   :  { %543 = vsyncpa [#allocation3 + $0x1], 1 }
 0x1b4   :  { %544 = vsyncpa [#allocation6], 1 }
 0x1b5   :  { %546 = vsyncpa [#allocation6 + $0x1], 1 }
 0x1b6   :  { %547 = vsyncpa [#allocation9], 1 }
 0x1b7   :  { %548 = vsyncpa [#allocation4], 1 }
 0x1b8   :  { %550 = vsyncpa [#allocation4 + $0x1], 1 }
 0x1b9   :  { %551 = vsyncpa [#allocation12], 1 }
 0x1ba   :  { %553 = vsyncpa [#allocation12 + $0x1], 1 }

</bundles_post_ra>
